<compile_context>
chip_gen: v7x
topology: tpu7x:2x2x1
jax: 0.10.0
libtpu: 0.0.40
codegen_flags: <defaults>
</compile_context>

<pallas_src>
import functools

import jax
import jax.numpy as jnp
from jax import lax
from jax.experimental import pallas as pl
from jax.experimental.pallas import tpu as pltpu


def _round_up(x, m):
    return ((x + m - 1) // m) * m


def _pow2_floor(x):
    p = 1
    while p * 2 <= x:
        p *= 2
    return p


_NEG_SLOPE = 0.01      # F.leaky_relu default negative_slope (what the module calls)
_NEG_BIG = -1e30       # finite "-inf": avoids inf-inf NaNs in the online softmax


def _elu(x):           # F.elu, alpha = 1
    return jnp.where(x > 0.0, x, jnp.exp(jnp.minimum(x, 0.0)) - 1.0)


def _tpu_defaults():
    """Generation-aware (vmem_limit_bytes, dst_tile, src_tile) defaults."""
    try:
        cap = int(getattr(pltpu.get_tpu_info(), "vmem_capacity_bytes", 0))
    except Exception:
        cap = 0
    if cap >= 100 * 1024 * 1024:                 # v5e / v6e: 128 MiB physical VMEM
        return 96 * 1024 * 1024, 512, 512
    return 48 * 1024 * 1024, 256, 512            # v7x (64 MiB) / unknown: conservative


# --------------------------------------------------------------------------------------
# Kernel 1: node-row-tiled projection. Two wide matmuls produce the concatenated
#   [ft | res | el | er] block (logit projectors pre-folded into the weights).
# --------------------------------------------------------------------------------------
def project_kernel(h_ref, at_ref, wh_ref, wt_ref, big_ref):
    big_ref[...] = (
        jnp.dot(h_ref[...], wh_ref[...], preferred_element_type=jnp.float32)
        + jnp.dot(at_ref[...], wt_ref[...], preferred_element_type=jnp.float32))


# --------------------------------------------------------------------------------------
# Kernel 2: (dst-tile x src-tile) masked edge-softmax + aggregation, online softmax.
#   adj_ref : (tn, tk)  int8            ftg_ref : (H, D+1, tk) bf16 (ones row appended)
#   el_ref  : (H, 1, tk) f32            er_ref  : (H, tn, 1)  f32
#   res_ref / out_ref : (tn, H*D) f32
#   scratch: m_ref (H, tn, 1) running max, acc_ref (H, tn, D+1) running numerator+denom
# --------------------------------------------------------------------------------------
def attention_kernel(adj_ref, ftg_ref, el_ref, er_ref, res_ref, out_ref,
                     m_ref, acc_ref, *, num_heads, head_dim):
    k = pl.program_id(1)

    @pl.when(k == 0)
    def _init():
        m_ref[...] = jnp.full_like(m_ref, _NEG_BIG)
        acc_ref[...] = jnp.zeros_like(acc_ref)

    mask = adj_ref[...] > 0                                    # computed once per tile

    for hh in range(num_heads):
        s = er_ref[hh] + el_ref[hh]                            # (tn,1)+(1,tk) VPU bcast
        s = jnp.maximum(s, _NEG_SLOPE * s)                     # leaky_relu (slope < 1)
        s = jnp.where(mask, s, _NEG_BIG)

        m_prev = m_ref[hh]                                     # (tn, 1)
        m_new = jnp.maximum(m_prev, jnp.max(s, axis=1, keepdims=True))
        p = jnp.where(mask, jnp.exp(s - m_new), 0.0)           # exact 0 on non-edges
        alpha = jnp.exp(m_prev - m_new)

        # (tn, tk) x (D+1, tk)^T -> (tn, D+1); last column accumulates the denominator.
        contrib = lax.dot_general(
            p.astype(jnp.bfloat16), ftg_ref[hh],
            dimension_numbers=(((1,), (1,)), ((), ())),
            preferred_element_type=jnp.float32)
        acc_ref[hh] = alpha * acc_ref[hh] + contrib
        m_ref[hh] = m_new

    @pl.when(k == pl.num_programs(1) - 1)
    def _finalize():
        D = head_dim
        for hh in range(num_heads):
            s = acc_ref[hh]                                    # (tn, D+1)
            denom = s[:, D:D + 1]
            denom = jnp.where(denom > 0.0, denom, 1.0)         # zero-in-degree -> 0
            rst = s[:, :D] / denom
            out_ref[:, hh * D:(hh + 1) * D] = _elu(rst + res_ref[:, hh * D:(hh + 1) * D])


# --------------------------------------------------------------------------------------
# Wrapper
# --------------------------------------------------------------------------------------
def temporal_gat_forward(h, t_edges, src, dst, params, *, num_heads, head_dim,
                         tile_nodes=None, tile_src=None):
    f32 = jnp.float32
    N, in_dim = h.shape
    E = int(t_edges.shape[0])
    time_dim = int(params["time_w"].shape[1])
    out_dim = num_heads * head_dim

    vmem_limit, tn_default, tk_default = _tpu_defaults()
    tile_nodes = tn_default if tile_nodes is None else tile_nodes
    tile_src = tk_default if tile_src is None else tile_src

    # power-of-two tiles: dst tile multiple of 32 (int8 adjacency), src tile multiple
    # of 128 (lane dim); pad N so both divide it.
    n_min = _round_up(N, 128)
    tn = max(32, _pow2_floor(min(tile_nodes, n_min)))
    tk = max(128, _pow2_floor(min(tile_src, n_min)))
    n_pad = _round_up(N, max(tn, tk))
    if n_pad // tn < 2 and tn > 32:      # keep >=2 dst steps so "parallel" can shard
        tn //= 2                         # across v7x's two TensorCores

    src = src.astype(jnp.int32)
    dst = dst.astype(jnp.int32)

    # ---- 1. per-edge time encoding + copy_e/mean scatter (plain XLA; trivial,
    #         memory-bound work that fuses with the segment ops) ----------------------
    # TODO(synk): MemoryEfficientTimeEncoding source unavailable; standard TGAT
    #             functional encoding cos(t * w + b) is used.
    time_emb = jnp.cos(t_edges.astype(f32)[:, None] * params["time_w"].astype(f32)
                       + params["time_b"].astype(f32))                      # (E, T)
    seg_sum = jax.ops.segment_sum(time_emb, dst, num_segments=N)
    deg = jax.ops.segment_sum(jnp.ones((E,), f32), dst, num_segments=N)
    agg_time = seg_sum / jnp.maximum(deg, 1.0)[:, None]                     # (N, T)

    # ---- padded node-major operands ---------------------------------------------------
    h_p = jnp.zeros((n_pad, in_dim), f32).at[:N].set(h.astype(f32))
    at_p = jnp.zeros((n_pad, time_dim), f32).at[:N].set(agg_time)
    # dense 0/1 adjacency adj[dst, src] as int8: used only as a mask, never on the MXU.
    adj = jnp.zeros((n_pad, n_pad), jnp.int8).at[dst, src].set(1)
    # TODO(synk): for genuinely sparse graphs a CSR / scalar-prefetch formulation would
    #             avoid this O(N^2) adjacency stream entirely.

    # ---- fold fc / residual / per-head logit projectors into two wide matmuls --------
    eye = jnp.eye(num_heads, dtype=f32)
    a_l = jnp.einsum("hd,hk->hdk", params["attn_l"].astype(f32), eye).reshape(out_dim, num_heads)
    a_r = jnp.einsum("hd,hk->hdk", params["attn_r"].astype(f32), eye).reshape(out_dim, num_heads)
    wfc_h, wfc_t = params["w_fc"][:in_dim].astype(f32), params["w_fc"][in_dim:].astype(f32)
    wres_h, wres_t = params["w_res"][:in_dim].astype(f32), params["w_res"][in_dim:].astype(f32)
    w_h_big = jnp.concatenate([wfc_h, wres_h, wfc_h @ a_l, wfc_h @ a_r], axis=1)
    w_t_big = jnp.concatenate([wfc_t, wres_t, wfc_t @ a_l, wfc_t @ a_r], axis=1)
    total_w = 2 * out_dim + 2 * num_heads

    cparams_proj = pltpu.CompilerParams(dimension_semantics=("parallel",),
                                        vmem_limit_bytes=vmem_limit)

    # ---- 2. projection kernel (row-tiled, megacore-parallel) --------------------------
    big = pl.pallas_call(
        project_kernel,
        out_shape=jax.ShapeDtypeStruct((n_pad, total_w), f32),
        grid=(n_pad // tn,),
        in_specs=[pl.BlockSpec((tn, in_dim), lambda i: (i, 0)),
                  pl.BlockSpec((tn, time_dim), lambda i: (i, 0)),
                  pl.BlockSpec((in_dim, total_w), lambda i: (0, 0)),
                  pl.BlockSpec((time_dim, total_w), lambda i: (0, 0))],
        out_specs=pl.BlockSpec((tn, total_w), lambda i: (i, 0)),
        compiler_params=cparams_proj,
    )(h_p, at_p, w_h_big, w_t_big)

    ft = big[:, :out_dim]
    res = big[:, out_dim:2 * out_dim]
    el = big[:, 2 * out_dim:2 * out_dim + num_heads]
    er = big[:, 2 * out_dim + num_heads:]

    # lane-dense head-major features (H, D, N) + ones row so the softmax denominator is
    # the last column of the same MXU matmul (tiny XLA relayouts).
    ft_hm = ft.reshape(n_pad, num_heads, head_dim).transpose(1, 2, 0)       # (H, D, N)
    ft_aug = jnp.concatenate([ft_hm, jnp.ones((num_heads, 1, n_pad), f32)],
                             axis=1).astype(jnp.bfloat16)                   # (H, D+1, N)
    el_3d = el.T.reshape(num_heads, 1, n_pad)                               # (H, 1, N)
    er_3d = er.T.reshape(num_heads, n_pad, 1)                               # (H, N, 1)

    # ---- 3. attention kernel: dst tiles (parallel) x src tiles (arbitrary) ------------
    cparams_attn = pltpu.CompilerParams(dimension_semantics=("parallel", "arbitrary"),
                                        vmem_limit_bytes=vmem_limit)
    kernel = functools.partial(attention_kernel, num_heads=num_heads, head_dim=head_dim)
    out = pl.pallas_call(
        kernel,
        out_shape=jax.ShapeDtypeStruct((n_pad, out_dim), f32),
        grid=(n_pad // tn, n_pad // tk),
        in_specs=[
            pl.BlockSpec((tn, tk), lambda i, k: (i, k)),                           # adj
            pl.BlockSpec((num_heads, head_dim + 1, tk), lambda i, k: (0, 0, k)),   # ft
            pl.BlockSpec((num_heads, 1, tk), lambda i, k: (0, 0, k)),              # el
            pl.BlockSpec((num_heads, tn, 1), lambda i, k: (0, i, 0)),              # er
            pl.BlockSpec((tn, out_dim), lambda i, k: (i, 0)),                      # res
        ],
        out_specs=pl.BlockSpec((tn, out_dim), lambda i, k: (i, 0)),
        scratch_shapes=[pltpu.VMEM((num_heads, tn, 1), f32),                 # running max
                        pltpu.VMEM((num_heads, tn, head_dim + 1), f32)],     # acc + denom
        compiler_params=cparams_attn,
    )(adj, ft_aug, el_3d, er_3d, res)

    return out[:N]


# --------------------------------------------------------------------------------------
# Pure-JAX reference (dense graph, eval mode) for a loose numerical check.
# --------------------------------------------------------------------------------------
def _reference(h, t_edges, src, dst, params, num_heads, head_dim):
    f32 = jnp.float32
    N = h.shape[0]
    E = t_edges.shape[0]
    time_emb = jnp.cos(t_edges.astype(f32)[:, None] * params["time_w"] + params["time_b"])
    seg = jax.ops.segment_sum(time_emb, dst, num_segments=N)
    deg = jax.ops.segment_sum(jnp.ones((E,), f32), dst, num_segments=N)
    agg = seg / jnp.maximum(deg, 1.0)[:, None]
    comb = jnp.concatenate([h.astype(f32), agg], axis=1)
    ft = comb @ params["w_fc"]
    res = comb @ params["w_res"]
    ftr = ft.reshape(N, num_heads, head_dim)
    el = jnp.einsum("nhd,hd->nh", ftr, params["attn_l"])
    er = jnp.einsum("nhd,hd->nh", ftr, params["attn_r"])
    e = el[src] + er[dst]
    e = jnp.where(e > 0, e, _NEG_SLOPE * e)
    emax = jax.ops.segment_max(e, dst, num_segments=N)
    p = jnp.exp(e - emax[dst])
    psum = jax.ops.segment_sum(p, dst, num_segments=N)
    a = p / jnp.maximum(psum[dst], 1e-30)
    msg = a[:, :, None] * ftr[src]
    rst = jax.ops.segment_sum(msg, dst, num_segments=N).reshape(N, -1)
    return _elu(rst + res)


if __name__ == "__main__":
    key = jax.random.PRNGKey(0)

    # Small, module-consistent shapes; tiles chosen so both grid axes have >1 step.
    N, E = 200, 600
    in_dim, time_dim, out_dim, num_heads = 32, 16, 32, 4
    head_dim = out_dim // num_heads
    f_in = in_dim + time_dim                 # GAT input = node feats + time feats

    ks = jax.random.split(key, 8)
    h = jax.random.normal(ks[0], (N, in_dim), jnp.float32)
    t_edges = jax.random.uniform(ks[1], (E,), jnp.float32) * 10.0

    idx = jnp.arange(E)
    src = (idx % N).astype(jnp.int32)
    dst = ((src + 1 + (idx // N) * 7) % N).astype(jnp.int32)   # simple graph, no dups

    xavier = (2.0 / (f_in + out_dim)) ** 0.5 * (2.0 ** 0.5)    # xavier_normal, gain('relu')
    params = {
        "time_w": jax.random.normal(ks[2], (1, time_dim), jnp.float32) * 0.5,
        "time_b": jax.random.normal(ks[3], (1, time_dim), jnp.float32) * 0.1,
        "w_fc":   jax.random.normal(ks[4], (f_in, out_dim), jnp.float32) * xavier,
        "w_res":  jax.random.normal(ks[5], (f_in, out_dim), jnp.float32) * xavier,
        "attn_l": jax.random.normal(ks[6], (num_heads, head_dim), jnp.float32) * 0.3,
        "attn_r": jax.random.normal(ks[7], (num_heads, head_dim), jnp.float32) * 0.3,
    }

    out = temporal_gat_forward(h, t_edges, src, dst, params,
                               num_heads=num_heads, head_dim=head_dim,
                               tile_nodes=64, tile_src=128)
    out = jax.block_until_ready(out)
    assert out.shape == (N, out_dim), out.shape
    assert bool(jnp.all(jnp.isfinite(out)))

    ref = _reference(h, t_edges, src, dst, params, num_heads, head_dim)
    err = float(jnp.max(jnp.abs(out - ref) / (jnp.abs(ref) + 1.0)))
    assert err < 0.1, f"max scaled error {err}"    # bf16 aggregation tolerance
    print("KERNEL_OK")
</pallas_src>

<mosaic_0001>
module attributes {stable_mosaic.version = 11 : i64} {
  func.func @project_kernel(%arg0: i32, %arg1: memref<64x32xf32, #tpu.memory_space<vmem>>, %arg2: memref<64x16xf32, #tpu.memory_space<vmem>>, %arg3: memref<32x72xf32, #tpu.memory_space<vmem>>, %arg4: memref<16x72xf32, #tpu.memory_space<vmem>>, %arg5: memref<64x72xf32, #tpu.memory_space<vmem>>) attributes {dimension_semantics = [#tpu.dimension_semantics<parallel>], iteration_bounds = array<i64: 4>, scalar_prefetch = 0 : i64, scratch_operands = 0 : i64, tpu.core_type = #tpu.core_type<tc>, window_params = [{transform_indices = @transform_0, window_bounds = array<i64: 64, 32>}, {transform_indices = @transform_1, window_bounds = array<i64: 64, 16>}, {pipeline_mode = #tpu.pipeline_mode<synchronous>, transform_indices = @transform_2, window_bounds = array<i64: 32, 72>}, {pipeline_mode = #tpu.pipeline_mode<synchronous>, transform_indices = @transform_3, window_bounds = array<i64: 16, 72>}, {transform_indices = @transform_4, window_bounds = array<i64: 64, 72>}]} {
    %c0 = arith.constant 0 : index
    %c0_0 = arith.constant 0 : index
    %0 = vector.load %arg1[%c0, %c0_0] : memref<64x32xf32, #tpu.memory_space<vmem>>, vector<64x32xf32>
    %c0_1 = arith.constant 0 : index
    %c0_2 = arith.constant 0 : index
    %1 = vector.load %arg3[%c0_1, %c0_2] : memref<32x72xf32, #tpu.memory_space<vmem>>, vector<32x72xf32>
    %cst = arith.constant dense<0.000000e+00> : vector<64x72xf32>
    %2 = tpu.matmul %0, %1, %cst {dimension_numbers = #tpu.dot_dimension_numbers<[1], [0], [0], [1], [0, 0, 1, 1], [], []>} : vector<64x32xf32>, vector<32x72xf32>, vector<64x72xf32> -> vector<64x72xf32>
    %c0_3 = arith.constant 0 : index
    %c0_4 = arith.constant 0 : index
    %3 = vector.load %arg2[%c0_3, %c0_4] : memref<64x16xf32, #tpu.memory_space<vmem>>, vector<64x16xf32>
    %c0_5 = arith.constant 0 : index
    %c0_6 = arith.constant 0 : index
    %4 = vector.load %arg4[%c0_5, %c0_6] : memref<16x72xf32, #tpu.memory_space<vmem>>, vector<16x72xf32>
    %cst_7 = arith.constant dense<0.000000e+00> : vector<64x72xf32>
    %5 = tpu.matmul %3, %4, %cst_7 {dimension_numbers = #tpu.dot_dimension_numbers<[1], [0], [0], [1], [0, 0, 1, 1], [], []>} : vector<64x16xf32>, vector<16x72xf32>, vector<64x72xf32> -> vector<64x72xf32>
    %6 = arith.addf %2, %5 : vector<64x72xf32>
    %c0_8 = arith.constant 0 : index
    %c0_9 = arith.constant 0 : index
    %7 = vector.load %arg5[%c0_8, %c0_9] : memref<64x72xf32, #tpu.memory_space<vmem>>, vector<64x72xf32>
    tpu.vector_store %arg5[%c0_8, %c0_9], %6 {strides = array<i32>} : memref<64x72xf32, #tpu.memory_space<vmem>>, vector<64x72xf32>,
    return
  }
  func.func @transform_0(%arg0: i32) -> (i32, i32) {
    %c0_i32 = arith.constant 0 : i32
    %c0_i32_0 = arith.constant 0 : i32
    return %arg0, %c0_i32 : i32, i32
  }
  func.func @transform_1(%arg0: i32) -> (i32, i32) {
    %c0_i32 = arith.constant 0 : i32
    %c0_i32_0 = arith.constant 0 : i32
    return %arg0, %c0_i32 : i32, i32
  }
  func.func @transform_2(%arg0: i32) -> (i32, i32) {
    %c0_i32 = arith.constant 0 : i32
    %c0_i32_0 = arith.constant 0 : i32
    %c0_i32_1 = arith.constant 0 : i32
    return %c0_i32, %c0_i32_0 : i32, i32
  }
  func.func @transform_3(%arg0: i32) -> (i32, i32) {
    %c0_i32 = arith.constant 0 : i32
    %c0_i32_0 = arith.constant 0 : i32
    %c0_i32_1 = arith.constant 0 : i32
    return %c0_i32, %c0_i32_0 : i32, i32
  }
  func.func @transform_4(%arg0: i32) -> (i32, i32) {
    %c0_i32 = arith.constant 0 : i32
    %c0_i32_0 = arith.constant 0 : i32
    return %arg0, %c0_i32 : i32, i32
  }
}

</mosaic_0001>

<bundles_post_ra>
// kernel: tpu_custom_call.1
= control target key start
LH: loop header
LB: loop body
LE: loop exit
PB: predicated region body
PF: predicated region fallthrough
CT: control target
= control target key end

     0   :  { %s730_s15 = smov 0   ;;  %s817_s0 = inlined_call_operand.vmem [shape: f32[256,32], index: 0, kind: input, shape index: {}]   ;;  %s818_s1 = inlined_call_operand.vmem [shape: f32[256,16], index: 1, kind: input, shape index: {}]   ;;  %s819_s2 = inlined_call_operand.vmem [shape: f32[32,72], index: 2, kind: input, shape index: {}]   ;;  %s820_s3 = inlined_call_operand.vmem [shape: f32[16,72], index: 3, kind: input, shape index: {}]   ;;  %s821_s4 = inlined_call_operand.vmem [shape: f32[256,72], index: 4, kind: output, shape index: {}]  }
   0x1 LB: > { %s582_s16 = sadd.s32 4294967295, %s703_s15   ;;  %p586_p0 = scmp.ge.s32.totalorder %s703_s15, 1  ;;  %s703_s15 = sphi %s730_s15, %s14_s15  }
   0x2   : > { %p174_p1 = scmp.lt.s32.totalorder %s703_s15, 5 }
   0x4   : > { %p175_p2 = pnand %p586_p0, %p174_p1 }
   0x5   : > { %v231_v0 = vld [vmem:[%s819_s2] sm:$0xff] (!%p175_p2)  ;;  %v232_v1 = vld [vmem:[%s819_s2 + $0x8] sm:$0xff] (!%p175_p2)  ;;  %s587_s23 = sshll.u32 (!%p175_p2), %s582_s16, 3  ;;  %v233_v5 = vld [vmem:[%s819_s2 + $0x10] sm:$0xff] (!%p175_p2)  ;;  %vm245_vm0 = vcmask (!%p175_p2), 130048   ;;  %vm375_vm1 = vcmask (!%p175_p2), 261120  }
   0x6   : > { %178 = sbr.rel (%p175_p2) target bundleno = 247 (0xf7), region = 36  ;;  %v243_v2 = vld [vmem:[%s820_s3] sm:$0xff] (!%p175_p2)  ;;  %v673_v3 = vpack.c.bf16 (!%p175_p2), %v232_v1, %v231_v0  ;;  %v244_v4 = vld [vmem:[%s820_s3 + $0x8] sm:$0xff] (!%p175_p2)  ;;  %v234_v6 = vld [vmem:[%s819_s2 + $0x18] sm:$0xff] (!%p175_p2)  ;;  %p206_p3 = scmp.lt.s32.totalorder (!%p175_p2), %s587_s23, 31  ;;  %vm505_vm2 = vcmask (!%p175_p2), 588800  }
   0x7   : > { %v669_v7 = vpack.c.bf16 (!%p175_p2), %v244_v4, %v243_v2  ;;  %v677_v8 = vpack.c.bf16 (!%p175_p2), %v234_v6, %v233_v5 }
   0x8   : > { %674 = vmatprep.subr.bf16.mxu0 (!%p175_p2), %v673_v3 }
   0x9   : > { %676 = vmatpush3.bf16.msra.mxu0 (!%p175_p2), %v673_v3  ;;  %670 = vmatprep.subr.bf16.mxu1 (!%p175_p2), %v669_v7 }
   0xa   : > { %672 = vmatpush3.bf16.msra.mxu1 (!%p175_p2), %v669_v7  ;;  %678 = vmatprep.subr.bf16.mxu0 (!%p175_p2), %v677_v8 }
   0xd   : > { %s823_s23 = smov (!%p206_p3, %s587_s23), 31  ;;  %680 = vmatpush3.bf16.msra.mxu0 %v677_v8 }
   0xe   : > { %s756_s30 = sshll.u32 %s823_s23, 3 }
   0xf   : > { %s215_s7 = scalar_lea.vmem %s818_s1, %s756_s30  ;;  %s766_s10 = scalar_lea.vmem %s817_s0, %s756_s30 }
  0x10   : > { %v235_v9 = vld [vmem:[%s215_s7] sm:$0xff]  ;;  %v236_v10 = vld [vmem:[%s215_s7 + $0x8] sm:$0xff]  ;;  %v237_v13 = vld [vmem:[%s215_s7 + $0x10] sm:$0xff]  ;;  %s796_s13 = scalar_lea.vmem %s821_s4, %s756_s30 }
  0x11   : > { %v223_v11 = vld [vmem:[%s766_s10] sm:$0xff]  ;;  %637 = vmatprep.mubr.msk.f32.mxu1 %vm245_vm0, %v235_v9  ;;  %v224_v12 = vld [vmem:[%s766_s10 + $0x8] sm:$0xff]  ;;  %v225_v14 = vld [vmem:[%s766_s10 + $0x10] sm:$0xff] }
  0x12   : > { %638 = vmatmul.mubr.msk.f32.vlgmr.msra.gmra.mrb[0].mxu1 %vm245_vm0, %v236_v10  ;;  %657 = vmatprep.mubr.msk.f32.mxu0 %vm375_vm1, %v223_v11  ;;  %v238_v15 = vld [vmem:[%s215_s7 + $0x18] sm:$0xff]  ;;  %v239_v16 = vld [vmem:[%s215_s7 + $0x20] sm:$0xff]  ;;  %v240_v19 = vld [vmem:[%s215_s7 + $0x28] sm:$0xff] }
  0x13   : > { %640 = vmatprep.mubr.msk.f32.mxu1 %vm245_vm0, %v237_v13  ;;  %658 = vmatmul.mubr.msk.f32.vlgmr.msra.gmra.mrb[0].mxu0 %vm375_vm1, %v224_v12  ;;  %v226_v17 = vld [vmem:[%s766_s10 + $0x18] sm:$0xff]  ;;  %v227_v18 = vld [vmem:[%s766_s10 + $0x20] sm:$0xff]  ;;  %v241_v20 = vld [vmem:[%s215_s7 + $0x30] sm:$0xff] }
  0x14   : > { %660 = vmatprep.mubr.msk.f32.mxu0 %vm375_vm1, %v225_v14  ;;  %v228_v21 = vld [vmem:[%s766_s10 + $0x28] sm:$0xff]  ;;  %v229_v22 = vld [vmem:[%s766_s10 + $0x30] sm:$0xff]  ;;  %v242_v23 = vld [vmem:[%s215_s7 + $0x38] sm:$0xff] }
  0x15   : > { %v230_v24 = vld [vmem:[%s766_s10 + $0x38] sm:$0xff] }
  0x16   : > { %641 = vmatmul.mubr.msk.f32.gmra.mrb[2].mxu1 %vm245_vm0, %v238_v15 }
  0x17   : > { %643 = vmatprep.mubr.msk.f32.mxu1 %vm245_vm0, %v239_v16  ;;  %661 = vmatmul.mubr.msk.f32.gmra.mrb[2].mxu0 %vm375_vm1, %v226_v17 }
  0x18   : > { %663 = vmatprep.mubr.msk.f32.mxu0 %vm375_vm1, %v227_v18 }
  0x1a   : > { %644 = vmatmul.mubr.msk.f32.gmra.mrb[4].mxu1 %vm245_vm0, %v240_v19 }
  0x1b   : > { %646 = vmatprep.mubr.msk.f32.mxu1 %vm245_vm0, %v241_v20  ;;  %664 = vmatmul.mubr.msk.f32.gmra.mrb[4].mxu0 %vm375_vm1, %v228_v21 }
  0x1c   : > { %666 = vmatprep.mubr.msk.f32.mxu0 %vm375_vm1, %v229_v22 }
  0x1e   : > { %647 = vmatmul.mubr.msk.f32.gmra.mrb[6].mxu1 %vm245_vm0, %v242_v23 }
  0x1f   : > { %667 = vmatmul.mubr.msk.f32.gmra.mrb[6].mxu0 %vm375_vm1, %v230_v24 }
  0xe5   : > { %v639_v25 = vpop.f32.mrb[0].mxu1 }
  0xe6   : > { %v336_v26 = vpop.f32.mrb[1].mxu1  ;;  %v659_v27 = vpop.f32.mrb[0].mxu0 }
  0xe7   : > { %v472_v28 = vadd.f32 %v659_v27, %v639_v25  ;;  %v466_v29 = vpop.f32.mrb[1].mxu0 }
  0xe8   : > { %v467_v30 = vadd.f32 %v466_v29, %v336_v26 }
  0xe9   : > { %v642_v31 = vpop.f32.mrb[2].mxu1  ;;  %507 = vst.msk [vmem:[%s796_s13 + $0x8] sm:$0xff] %vm505_vm2, %v472_v28 }
  0xea   : > { %v346_v32 = vpop.f32.mrb[3].mxu1  ;;  %506 = vst.msk [vmem:[%s796_s13] sm:$0xff] %vm505_vm2, %v467_v30  ;;  %v662_v33 = vpop.f32.mrb[2].mxu0 }
  0xeb   : > { %v482_v34 = vadd.f32 %v662_v33, %v642_v31  ;;  %v476_v35 = vpop.f32.mrb[3].mxu0 }
  0xec   : > { %v477_v36 = vadd.f32 %v476_v35, %v346_v32 }
  0xed   : > { %v645_v37 = vpop.f32.mrb[4].mxu1  ;;  %509 = vst.msk [vmem:[%s796_s13 + $0x18] sm:$0xff] %vm505_vm2, %v482_v34 }
  0xee   : > { %v356_v38 = vpop.f32.mrb[5].mxu1  ;;  %508 = vst.msk [vmem:[%s796_s13 + $0x10] sm:$0xff] %vm505_vm2, %v477_v36  ;;  %v665_v39 = vpop.f32.mrb[4].mxu0 }
  0xef   : > { %v492_v40 = vadd.f32 %v665_v39, %v645_v37  ;;  %v486_v41 = vpop.f32.mrb[5].mxu0 }
  0xf0   : > { %v487_v42 = vadd.f32 %v486_v41, %v356_v38 }
  0xf1   : > { %v648_v43 = vpop.f32.mrb[6].mxu1  ;;  %511 = vst.msk [vmem:[%s796_s13 + $0x28] sm:$0xff] %vm505_vm2, %v492_v40 }
  0xf2   : > { %v366_v44 = vpop.f32.mrb[7].mxu1  ;;  %510 = vst.msk [vmem:[%s796_s13 + $0x20] sm:$0xff] %vm505_vm2, %v487_v42  ;;  %v668_v45 = vpop.f32.mrb[6].mxu0 }
  0xf3   : > { %v502_v46 = vadd.f32 %v668_v45, %v648_v43  ;;  %v496_v47 = vpop.f32.mrb[7].mxu0 }
  0xf4   : > { %v497_v48 = vadd.f32 %v496_v47, %v366_v44 }
  0xf5   : > { %513 = vst.msk [vmem:[%s796_s13 + $0x38] sm:$0xff] %vm505_vm2, %v502_v46 }
  0xf6   : > { %512 = vst.msk [vmem:[%s796_s13 + $0x30] sm:$0xff] %vm505_vm2, %v497_v48 }
  0xf7 PF: > { %s14_s15 = sadd.s32 1, %s703_s15  }
  0xf8   : > { %p11_p4 = scmp.ge.s32.totalorder %s14_s15, 6  }
  0xfa   :  { %13 = sbr.rel (!%p11_p4) target bundleno = 1 (0x1), region = 69 }

</bundles_post_ra>
